<compile_context>
chip_gen: v5e
topology: v5e:2x2
jax: 0.10.0
libtpu: 0.0.40
codegen_flags: <defaults>
</compile_context>

<pallas_src>
import jax
import jax.numpy as jnp
from jax.experimental import pallas as pl
from jax.experimental.pallas import tpu as pltpu


def _round_up(x, m):
    return (x + m - 1) // m * m


# ---------------------------------------------------------------------------
# Single-step kernel: new_hidden/reward packed into one lane-dense [bm, 128]
# ---------------------------------------------------------------------------
def dynamics_kernel(hidden_ref, action_ref, w1h_ref, w1a_ref, b1_ref,
                    w2r_ref, b2r_ref, out_ref):
    H = hidden_ref.shape[-1]

    # h1 = relu(l1([hidden, action])) == relu(hidden @ W1h + action * W1a + b1)
    # (hidden cast to bf16 here, not in the wrapper -> no extra HBM pass.)
    h1 = jnp.dot(hidden_ref[...].astype(jnp.bfloat16), w1h_ref[...],
                 preferred_element_type=jnp.float32)
    h1 = h1 + action_ref[...] * w1a_ref[...] + b1_ref[...]
    h1 = jnp.maximum(h1, 0.0)

    # Fused l2 + reward head: one matmul against packed [H, 128] weights.
    # NOTE: h1 is rounded to bf16 for the MXU; if reward ever needs tighter
    # accuracy, compute its K=32 contraction in f32 on the VPU.
    z = jnp.dot(h1.astype(w2r_ref.dtype), w2r_ref[...],
                preferred_element_type=jnp.float32) + b2r_ref[...]

    # relu on the full tile; tanh only on the single reward column (cheap on
    # v5e's lone EUP), merged back with a lane-broadcast select -> one
    # lane-dense store.
    zr = jnp.maximum(z, 0.0)
    rew = jnp.tanh(z[:, H:H + 1])                              # [bm, 1]
    col = jax.lax.broadcasted_iota(jnp.int32, z.shape, dimension=1)
    out_ref[...] = jnp.where(col == H, rew, zr).astype(out_ref.dtype)


def dynamics_forward(hidden, action, params, *, block_b=1024,
                     out_dtype=jnp.bfloat16):
    """hidden [B,H], action [B] / [B,1] / scalar -> (new_hidden [B,H], reward [B,1])."""
    B, H = hidden.shape
    out_w = params["w2r"].shape[1]

    action = jnp.asarray(action, jnp.float32).reshape(-1, 1)   # .view(-1, 1)
    if action.shape[0] != B:                                   # scalar action case
        action = jnp.broadcast_to(action, (B, 1))

    # Block size: tiny batches -> one full block (no padding constraints);
    # moderate batches -> >= 2 blocks so both v7x TensorCores get work;
    # large batches -> block_b rows per step (grid handles the ragged tail).
    if B <= 64:
        bm = B
    elif B <= block_b:
        bm = _round_up(pl.cdiv(B, 2), 8)
    else:
        bm = block_b
    grid = (pl.cdiv(B, bm),)

    def resident(shape):                          # weights: same block every step
        return pl.BlockSpec(shape, lambda i: (0, 0))

    out = pl.pallas_call(
        dynamics_kernel,
        out_shape=jax.ShapeDtypeStruct((B, out_w), out_dtype),
        grid_spec=pltpu.PrefetchScalarGridSpec(
            num_scalar_prefetch=0,
            grid=grid,
            in_specs=[
                pl.BlockSpec((bm, H), lambda i: (i, 0)),     # hidden (f32 in HBM)
                pl.BlockSpec((bm, 1), lambda i: (i, 0)),     # action
                resident(params["w1h"].shape),
                resident(params["w1a"].shape),
                resident(params["b1"].shape),
                resident(params["w2r"].shape),
                resident(params["b2r"].shape),
            ],
            out_specs=pl.BlockSpec((bm, out_w), lambda i: (i, 0)),
        ),
        compiler_params=pltpu.CompilerParams(
            dimension_semantics=("parallel",)),
    )(hidden, action, params["w1h"], params["w1a"], params["b1"],
      params["w2r"], params["b2r"])

    new_hidden = out[:, :H]
    reward = out[:, H:H + 1]
    return new_hidden, reward


# ---------------------------------------------------------------------------
# Fused multi-step rollout kernel: hidden stays in VMEM across all T steps
# ---------------------------------------------------------------------------
def rollout_kernel(h0_ref, act_ref, w1hr_ref, w1a_ref, b1_ref, w2r_ref,
                   b2r_ref, hout_ref, rew_ref, hid_sc):
    t = pl.program_id(0)
    H = h0_ref.shape[-1]

    @pl.when(t == 0)
    def _():
        hid_sc[...] = jnp.zeros_like(hid_sc)          # zero the 128-lane pad
        hid_sc[:, :H] = h0_ref[...].astype(hid_sc.dtype)

    # Hidden lives 128-lane padded in VMEM; w1hr's zero rows (>= H) make the
    # padding lanes (which hold last step's packed reward/pad columns) inert.
    h_bf = hid_sc[...].astype(jnp.bfloat16)                               # [B, P]
    h1 = jnp.dot(h_bf, w1hr_ref[...], preferred_element_type=jnp.float32)  # [B, H]
    h1 = h1 + act_ref[0] * w1a_ref[...] + b1_ref[...]
    h1 = jnp.maximum(h1, 0.0)

    z = jnp.dot(h1.astype(w2r_ref.dtype), w2r_ref[...],
                preferred_element_type=jnp.float32) + b2r_ref[...]         # [B, P]

    hid_sc[...] = jnp.maximum(z, 0.0)            # lane-dense scratch update
    rew_ref[0] = jnp.tanh(z[:, H:H + 1]).astype(rew_ref.dtype)

    @pl.when(t == pl.num_programs(0) - 1)
    def _():
        hout_ref[...] = hid_sc[...].astype(hout_ref.dtype)


def dynamics_rollout(hidden, actions, params, *, out_dtype=jnp.bfloat16):
    """Run T dynamics steps in ONE kernel launch (hidden resident in VMEM).

    hidden  [B, H]   initial hidden state
    actions [T, B]   (or [T, B, 1]) per-step actions
    returns (final_hidden [B, H], rewards [T, B, 1])
    """
    B, H = hidden.shape
    T = actions.shape[0]
    P = params["w2r"].shape[1]
    actions = jnp.asarray(actions, jnp.float32).reshape(T, B, 1)

    def resident(shape):
        return pl.BlockSpec(shape, lambda t: (0, 0))

    # TODO(synk): add an outer "parallel" batch-block grid axis (scratch per
    # batch block) if rollout batches ever exceed a few thousand rows.
    hout, rewards = pl.pallas_call(
        rollout_kernel,
        out_shape=(jax.ShapeDtypeStruct((B, P), out_dtype),
                   jax.ShapeDtypeStruct((T, B, 1), jnp.float32)),
        grid_spec=pltpu.PrefetchScalarGridSpec(
            num_scalar_prefetch=0,
            grid=(T,),
            in_specs=[
                pl.BlockSpec((B, H), lambda t: (0, 0)),        # hidden0 (resident)
                pl.BlockSpec((1, B, 1), lambda t: (t, 0, 0)),  # action for step t
                resident(params["w1h_roll"].shape),
                resident(params["w1a"].shape),
                resident(params["b1"].shape),
                resident(params["w2r"].shape),
                resident(params["b2r"].shape),
            ],
            out_specs=(pl.BlockSpec((B, P), lambda t: (0, 0)),       # final hidden
                       pl.BlockSpec((1, B, 1), lambda t: (t, 0, 0))),  # rewards
            scratch_shapes=[pltpu.VMEM((B, P), jnp.float32)],
        ),
        compiler_params=pltpu.CompilerParams(
            dimension_semantics=("arbitrary",)),
    )(hidden, actions, params["w1h_roll"], params["w1a"], params["b1"],
      params["w2r"], params["b2r"])

    return hout[:, :H], rewards


# ---------------------------------------------------------------------------
# Parameters / references
# ---------------------------------------------------------------------------
def init_params(key, hidden_size):
    """Deterministic synthetic parameters.

    PyTorch nn.Linear stores weight as [out, in]; here weights are transposed
    to [in, out], then l1 is split into its hidden part (MXU) and action row
    (VPU broadcast), and l2 + reward head are packed into one lane-dense
    [H, 128] slab.  A 128-row zero-padded copy of l1's hidden part is kept for
    the fused-rollout kernel.  Matmul weights are pre-cast to bf16 once.
    (On v6e/v7x additional heads could be packed up to 256 output lanes.)
    """
    k1, k2, k3, k4, k5, k6 = jax.random.split(key, 6)
    H = hidden_size
    out_w = _round_up(H + 1, 128)
    scale = 0.1

    w1 = scale * jax.random.normal(k1, (H + 1, H), jnp.float32)   # l1
    b1 = scale * jax.random.normal(k2, (1, H), jnp.float32)
    w2 = scale * jax.random.normal(k3, (H, H), jnp.float32)       # l2
    b2 = scale * jax.random.normal(k4, (1, H), jnp.float32)
    wr = scale * jax.random.normal(k5, (H, 1), jnp.float32)       # reward head
    br = scale * jax.random.normal(k6, (1, 1), jnp.float32)

    w2r = jnp.zeros((H, out_w), jnp.float32)
    w2r = w2r.at[:, :H].set(w2).at[:, H:H + 1].set(wr)
    b2r = jnp.zeros((1, out_w), jnp.float32)
    b2r = b2r.at[:, :H].set(b2).at[:, H:H + 1].set(br)
    w1h_roll = jnp.zeros((out_w, H), jnp.float32).at[:H].set(w1[:H])

    return {
        "w1h": w1[:H].astype(jnp.bfloat16),        # hidden part of l1 (MXU, bf16)
        "w1h_roll": w1h_roll.astype(jnp.bfloat16),  # same, zero-padded to 128 rows
        "w1a": w1[H:H + 1],                        # action row of l1 (VPU, f32)
        "b1": b1,
        "w2r": w2r.astype(jnp.bfloat16),           # packed [l2 | reward | 0-pad]
        "b2r": b2r,
    }


def reference_forward(hidden, action, params):
    """Plain-JAX f32 reference mirroring the PyTorch forward, same params."""
    B, H = hidden.shape
    action = jnp.asarray(action, jnp.float32).reshape(-1, 1)
    if action.shape[0] != B:
        action = jnp.broadcast_to(action, (B, 1))
    w1 = jnp.concatenate(
        [params["w1h"].astype(jnp.float32), params["w1a"]], axis=0)
    w2r = params["w2r"].astype(jnp.float32)
    b2r = params["b2r"]

    x = jnp.concatenate([hidden.astype(jnp.float32), action], axis=-1)
    h1 = jax.nn.relu(x @ w1 + params["b1"])
    new_hidden = jax.nn.relu(h1 @ w2r[:, :H] + b2r[:, :H])
    reward = jnp.tanh(h1 @ w2r[:, H:H + 1] + b2r[:, H:H + 1])
    return new_hidden, reward


def reference_rollout(hidden, actions, params):
    h = hidden
    rewards = []
    for t in range(actions.shape[0]):
        h, r = reference_forward(h, actions[t], params)
        rewards.append(r)
    return h, jnp.stack(rewards)


if __name__ == "__main__":
    B = 2
    HIDDEN_SIZE = 32
    ACTION_SIZE = 9  # tictactoe; unused by the forward math (matches the module)
    STEPS = 5

    key = jax.random.PRNGKey(0)
    k_params, k_hidden, k_action, k_roll = jax.random.split(key, 4)

    params = init_params(k_params, HIDDEN_SIZE)
    hidden = jax.random.normal(k_hidden, (B, HIDDEN_SIZE), jnp.float32)
    action = jax.random.randint(k_action, (B,), 0, ACTION_SIZE).astype(jnp.float32)

    # --- single-step forward (matches DynamicsNet.forward) -----------------
    new_hidden, reward = dynamics_forward(hidden, action, params)
    jax.block_until_ready((new_hidden, reward))

    ref_hidden, ref_reward = reference_forward(hidden, action, params)
    assert new_hidden.shape == (B, HIDDEN_SIZE) and reward.shape == (B, 1)
    # bf16 matmul operands + bf16 output (f32 accumulate) -> loosened tolerance.
    assert jnp.allclose(new_hidden.astype(jnp.float32), ref_hidden,
                        atol=3e-2, rtol=3e-2), (
        float(jnp.max(jnp.abs(new_hidden.astype(jnp.float32) - ref_hidden))))
    assert jnp.allclose(reward.astype(jnp.float32), ref_reward,
                        atol=3e-2, rtol=3e-2), (
        float(jnp.max(jnp.abs(reward.astype(jnp.float32) - ref_reward))))

    # --- fused multi-step rollout (one launch, hidden resident in VMEM) ----
    actions = jax.random.randint(
        k_roll, (STEPS, B), 0, ACTION_SIZE).astype(jnp.float32)
    h_T, rewards = dynamics_rollout(hidden, actions, params)
    jax.block_until_ready((h_T, rewards))

    ref_hT, ref_rewards = reference_rollout(hidden, actions, params)
    assert h_T.shape == (B, HIDDEN_SIZE) and rewards.shape == (STEPS, B, 1)
    assert jnp.allclose(h_T.astype(jnp.float32), ref_hT,
                        atol=5e-2, rtol=5e-2), (
        float(jnp.max(jnp.abs(h_T.astype(jnp.float32) - ref_hT))))
    assert jnp.allclose(rewards, ref_rewards, atol=5e-2, rtol=5e-2), (
        float(jnp.max(jnp.abs(rewards - ref_rewards))))

    print("KERNEL_OK")
</pallas_src>

<mosaic_0001>
module attributes {stable_mosaic.version = 11 : i64} {
  func.func @dynamics_kernel(%arg0: i32, %arg1: memref<2x32xf32, #tpu.memory_space<vmem>>, %arg2: memref<2x1xf32, #tpu.memory_space<vmem>>, %arg3: memref<32x32xbf16, #tpu.memory_space<vmem>>, %arg4: memref<1x32xf32, #tpu.memory_space<vmem>>, %arg5: memref<1x32xf32, #tpu.memory_space<vmem>>, %arg6: memref<32x128xbf16, #tpu.memory_space<vmem>>, %arg7: memref<1x128xf32, #tpu.memory_space<vmem>>, %arg8: memref<2x128xbf16, #tpu.memory_space<vmem>>) attributes {dimension_semantics = [#tpu.dimension_semantics<parallel>], iteration_bounds = array<i64: 1>, scalar_prefetch = 0 : i64, scratch_operands = 0 : i64, tpu.core_type = #tpu.core_type<tc>, window_params = [{transform_indices = @transform_0, window_bounds = array<i64: 2, 32>}, {transform_indices = @transform_1, window_bounds = array<i64: 2, 1>}, {pipeline_mode = #tpu.pipeline_mode<synchronous>, transform_indices = @transform_2, window_bounds = array<i64: 32, 32>}, {pipeline_mode = #tpu.pipeline_mode<synchronous>, transform_indices = @transform_3, window_bounds = array<i64: 1, 32>}, {pipeline_mode = #tpu.pipeline_mode<synchronous>, transform_indices = @transform_4, window_bounds = array<i64: 1, 32>}, {pipeline_mode = #tpu.pipeline_mode<synchronous>, transform_indices = @transform_5, window_bounds = array<i64: 32, 128>}, {pipeline_mode = #tpu.pipeline_mode<synchronous>, transform_indices = @transform_6, window_bounds = array<i64: 1, 128>}, {transform_indices = @transform_7, window_bounds = array<i64: 2, 128>}]} {
    %c0 = arith.constant 0 : index
    %c0_0 = arith.constant 0 : index
    %0 = vector.load %arg1[%c0, %c0_0] : memref<2x32xf32, #tpu.memory_space<vmem>>, vector<2x32xf32>
    %1 = arith.truncf %0 : vector<2x32xf32> to vector<2x32xbf16>
    %c0_1 = arith.constant 0 : index
    %c0_2 = arith.constant 0 : index
    %2 = vector.load %arg3[%c0_1, %c0_2] : memref<32x32xbf16, #tpu.memory_space<vmem>>, vector<32x32xbf16>
    %cst = arith.constant dense<0.000000e+00> : vector<2x32xf32>
    %3 = tpu.matmul %1, %2, %cst {dimension_numbers = #tpu.dot_dimension_numbers<[1], [0], [0], [1], [0, 0, 1, 1], [], []>} : vector<2x32xbf16>, vector<32x32xbf16>, vector<2x32xf32> -> vector<2x32xf32>
    %c0_3 = arith.constant 0 : index
    %c0_4 = arith.constant 0 : index
    %4 = vector.load %arg2[%c0_3, %c0_4] : memref<2x1xf32, #tpu.memory_space<vmem>>, vector<2x1xf32>
    %c0_5 = arith.constant 0 : index
    %c0_6 = arith.constant 0 : index
    %5 = vector.load %arg4[%c0_5, %c0_6] : memref<1x32xf32, #tpu.memory_space<vmem>>, vector<1x32xf32>
    %6 = vector.broadcast %4 : vector<2x1xf32> to vector<2x32xf32>
    %7 = vector.broadcast %5 : vector<1x32xf32> to vector<2x32xf32>
    %8 = arith.mulf %6, %7 : vector<2x32xf32>
    %9 = arith.addf %3, %8 : vector<2x32xf32>
    %c0_7 = arith.constant 0 : index
    %c0_8 = arith.constant 0 : index
    %10 = vector.load %arg5[%c0_7, %c0_8] : memref<1x32xf32, #tpu.memory_space<vmem>>, vector<1x32xf32>
    %11 = vector.broadcast %10 : vector<1x32xf32> to vector<2x32xf32>
    %12 = arith.addf %9, %11 : vector<2x32xf32>
    %cst_9 = arith.constant 0.000000e+00 : f32
    %13 = vector.broadcast %cst_9 : f32 to vector<2x32xf32>
    %14 = arith.maximumf %12, %13 : vector<2x32xf32>
    %15 = arith.truncf %14 : vector<2x32xf32> to vector<2x32xbf16>
    %c0_10 = arith.constant 0 : index
    %c0_11 = arith.constant 0 : index
    %16 = vector.load %arg6[%c0_10, %c0_11] : memref<32x128xbf16, #tpu.memory_space<vmem>>, vector<32x128xbf16>
    %cst_12 = arith.constant dense<0.000000e+00> : vector<2x128xf32>
    %17 = tpu.matmul %15, %16, %cst_12 {dimension_numbers = #tpu.dot_dimension_numbers<[1], [0], [0], [1], [0, 0, 1, 1], [], []>} : vector<2x32xbf16>, vector<32x128xbf16>, vector<2x128xf32> -> vector<2x128xf32>
    %c0_13 = arith.constant 0 : index
    %c0_14 = arith.constant 0 : index
    %18 = vector.load %arg7[%c0_13, %c0_14] : memref<1x128xf32, #tpu.memory_space<vmem>>, vector<1x128xf32>
    %19 = vector.broadcast %18 : vector<1x128xf32> to vector<2x128xf32>
    %20 = arith.addf %17, %19 : vector<2x128xf32>
    %cst_15 = arith.constant 0.000000e+00 : f32
    %21 = vector.broadcast %cst_15 : f32 to vector<2x128xf32>
    %22 = arith.maximumf %20, %21 : vector<2x128xf32>
    %23 = vector.extract_strided_slice %20 {offsets = [0, 32], sizes = [2, 1], strides = [1, 1]} : vector<2x128xf32> to vector<2x1xf32>
    %24 = math.tanh %23 : vector<2x1xf32>
    %25 = tpu.iota {dimensions = array<i32: 1>} : vector<2x128xi32>
    %c32_i32 = arith.constant 32 : i32
    %26 = vector.broadcast %c32_i32 : i32 to vector<2x128xi32>
    %27 = arith.cmpi eq, %25, %26 : vector<2x128xi32>
    %28 = vector.shape_cast %24 : vector<2x1xf32> to vector<2x1xf32>
    %29 = vector.broadcast %28 : vector<2x1xf32> to vector<2x128xf32>
    %30 = arith.select %27, %29, %22 : vector<2x128xi1>, vector<2x128xf32>
    %31 = arith.truncf %30 : vector<2x128xf32> to vector<2x128xbf16>
    %c0_16 = arith.constant 0 : index
    %c0_17 = arith.constant 0 : index
    %32 = vector.load %arg8[%c0_16, %c0_17] : memref<2x128xbf16, #tpu.memory_space<vmem>>, vector<2x128xbf16>
    tpu.vector_store %arg8[%c0_16, %c0_17], %31 {strides = array<i32>} : memref<2x128xbf16, #tpu.memory_space<vmem>>, vector<2x128xbf16>,
    return
  }
  func.func @transform_0(%arg0: i32) -> (i32, i32) {
    %c0_i32 = arith.constant 0 : i32
    %c0_i32_0 = arith.constant 0 : i32
    return %arg0, %c0_i32 : i32, i32
  }
  func.func @transform_1(%arg0: i32) -> (i32, i32) {
    %c0_i32 = arith.constant 0 : i32
    %c0_i32_0 = arith.constant 0 : i32
    return %arg0, %c0_i32 : i32, i32
  }
  func.func @transform_2(%arg0: i32) -> (i32, i32) {
    %c0_i32 = arith.constant 0 : i32
    %c0_i32_0 = arith.constant 0 : i32
    %c0_i32_1 = arith.constant 0 : i32
    return %c0_i32, %c0_i32_0 : i32, i32
  }
  func.func @transform_3(%arg0: i32) -> (i32, i32) {
    %c0_i32 = arith.constant 0 : i32
    %c0_i32_0 = arith.constant 0 : i32
    %c0_i32_1 = arith.constant 0 : i32
    return %c0_i32, %c0_i32_0 : i32, i32
  }
  func.func @transform_4(%arg0: i32) -> (i32, i32) {
    %c0_i32 = arith.constant 0 : i32
    %c0_i32_0 = arith.constant 0 : i32
    %c0_i32_1 = arith.constant 0 : i32
    return %c0_i32, %c0_i32_0 : i32, i32
  }
  func.func @transform_5(%arg0: i32) -> (i32, i32) {
    %c0_i32 = arith.constant 0 : i32
    %c0_i32_0 = arith.constant 0 : i32
    %c0_i32_1 = arith.constant 0 : i32
    return %c0_i32, %c0_i32_0 : i32, i32
  }
  func.func @transform_6(%arg0: i32) -> (i32, i32) {
    %c0_i32 = arith.constant 0 : i32
    %c0_i32_0 = arith.constant 0 : i32
    %c0_i32_1 = arith.constant 0 : i32
    return %c0_i32, %c0_i32_0 : i32, i32
  }
  func.func @transform_7(%arg0: i32) -> (i32, i32) {
    %c0_i32 = arith.constant 0 : i32
    %c0_i32_0 = arith.constant 0 : i32
    return %arg0, %c0_i32 : i32, i32
  }
}

</mosaic_0001>

<bundles_post_ra>
// kernel: tpu_custom_call.1
= control target key start
LH: loop header
LB: loop body
LE: loop exit
PB: predicated region body
PF: predicated region fallthrough
CT: control target
= control target key end

     0   :  { %12 = vsyncpa [#allocation3], 0  ;;  %s367_s0 = inlined_call_operand.vmem [shape: f32[2,32], index: 0, kind: input, shape index: {}]   ;;  %s368_s1 = inlined_call_operand.vmem [shape: f32[2,1], index: 1, kind: input, shape index: {}]   ;;  %s369_s2 = inlined_call_operand.hbm [shape: bf16[32,32], index: 2, kind: input, shape index: {}]   ;;  %s370_s3 = inlined_call_operand.vmem [shape: f32[1,32], index: 3, kind: input, shape index: {}]   ;;  %s371_s4 = inlined_call_operand.vmem [shape: f32[1,32], index: 4, kind: input, shape index: {}]   ;;  %s372_s5 = inlined_call_operand.hbm [shape: bf16[32,128], index: 5, kind: input, shape index: {}]   ;;  %s373_s6 = inlined_call_operand.vmem [shape: f32[1,128], index: 6, kind: input, shape index: {}]   ;;  %s374_s7 = inlined_call_operand.hbm [shape: bf16[2,128], index: 7, kind: output, shape index: {}]  }
   0x1   :  { %13 = vsyncpa [#allocation6], 0 }
   0x2   :  { %14 = vsyncpa [#allocation4], 0  ;;  %s23_s26 = sshll.u32 %s369_s2, 4  ;;  %s294_s27 = smov [#allocation2]   ;;  %s24_s26 = int_to_ptr.hbm [resolvable:$true] %s23_s26 }
   0x3   :  { %s25_s28 = sshll.u32 %s294_s27, 4  ;;  %s40_s8 = sshll.u32 %s372_s5, 4  ;;  %s26_s28 = int_to_ptr.vmem [resolvable:$true] %s25_s28  ;;  %s41_s8 = int_to_ptr.hbm [resolvable:$true] %s40_s8 }
   0x4   :  { %s295_s9 = smov 64   ;;  %s296_s10 = smov 4  }
   0x5   :  { %31 = dma.hbm_to_vmem [thread:$0]  %s24_s26, 256, %s26_s28, [#allocation3], %s295_s9, %s295_s9, %s296_s10  }
   0x6   :  { %s297_s11 = smov [#allocation5]  }
   0x7   :  { %s42_s12 = sshll.u32 %s297_s11, 4  ;;  %s43_s12 = int_to_ptr.vmem [resolvable:$true] %s42_s12 }
   0x8   :  { %48 = dma.hbm_to_vmem [thread:$0]  %s41_s8, 256, %s43_s12, [#allocation6], %s295_s9, %s295_s9, %s296_s10  }
   0x9   :  { %288 = dma.done.wait [#allocation3], 256  }
   0xa   :  { %289 = vsyncadd [#allocation3], 4294967040 }
   0xb   :  { %290 = dma.done.wait [#allocation6], 256  }
   0xc   :  { %291 = vsyncadd [#allocation6], 4294967040  ;;  %v298_v0 = vmov 0   ;;  %v199_v1 = vld [vmem:[#allocation2 + $0x8] sm:$0xff]  ;;  %v198_v2 = vld [vmem:[#allocation2] sm:$0xff]  ;;  %vm89_vm0 = vcmask 261120   ;;  %v151_v24 = vlaneseq }
   0xd   :  { %209 = vset.pattern.permute.xlu0 %v298_v0  ;;  %v66_v3 = vld [vmem:[%s368_s1] sm:$0x3]  ;;  %99 = vmatpush.bf16.msra.mxu0 %v199_v1  ;;  %v201_v6 = vld [vmem:[#allocation5 + $0x8] sm:$0xff]  ;;  %v200_v7 = vld [vmem:[#allocation5] sm:$0xff]  ;;  %v299_v18 = vmov 32   ;;  %s169_s21 = sshll.u32 %s374_s7, 4  ;;  %s170_s21 = int_to_ptr.hbm [resolvable:$true] %s169_s21 }
   0xe   :  { %v60_v4 = vld [vmem:[%s367_s0] sm:$0x3]  ;;  %70 = vperm.xlu0 %209, %v66_v3   ;;  %142 = vmatpush.bf16.msra.mxu1 %v201_v6  ;;  %v152_v25 = vand.u32 127, %v151_v24 }
   0xf   :  { %v61_v5 = vpack.c.bf16 %v60_v4, %v60_v4  ;;  %v211_v8 = vld [vmem:[%s370_s3] ss:$0 sm:$0xff]  ;;  %s300_s3 = smov [#allocation7]  }
  0x10   :  { %v212_v11 = vld [vmem:[%s371_s4] ss:$0 sm:$0xff]  ;;  %vm153_vm1 = vcmp.eq.s32.totalorder %v152_v25, 32  ;;  %s167_s4 = sshll.u32 %s300_s3, 4  ;;  %s168_s4 = int_to_ptr.vmem [resolvable:$true] %s167_s4 }
  0x11   :  { %100 = vmatpush.bf16.msra.mxu0 %v198_v2  ;;  %v213_v19 = vld [vmem:[%s373_s6] ss:$0 sm:$0xff] }
  0x12   :  { %143 = vmatpush.bf16.msra.mxu1 %v200_v7 }
  0x14   :  { %188 = vmatmul.msk.bf16.vlgmr.msra.gmra.mxu0 %vm89_vm0, %v61_v5 }
  0x16   :  { %210 = vset.pattern.permute.xlu0 %v299_v18 }
  0x80   :  { %v71_v9 = vpop.permute.xlu0 %70 }
  0x81   :  { %v76_v10 = vmul.f32 %v211_v8, %v71_v9 }
  0x91   :  { %v102_v12 = vpop.f32.mrf.mxu0 }
  0x92   :  { %v103_v13 = vadd.f32 %v102_v12, %v76_v10 }
  0x94   :  { %v110_v14 = vadd.f32 %v212_v11, %v103_v13 }
  0x96   :  { %v111_v15 = vmax.f32 %v110_v14, 0.0 }
  0x98   :  { %v112_v16 = vpack.c.bf16 %v111_v15, %v111_v15 }
  0x99   :  { %v104_v17 = vpop.f32.mrf.mxu0 }
  0x9a   :  { %197 = vmatmul.msk.bf16.vlgmr.msra.gmra.mxu1 %vm89_vm0, %v112_v16 }
 0x117   :  { %v145_v20 = vpop.f32.mrf.mxu1 }
 0x118   :  { %v146_v21 = vadd.f32 %v213_v19, %v145_v20 }
 0x11a   :  { %214 = vtanh.f32 %v146_v21  ;;  %v149_v26 = vmax.f32 %v146_v21, 0.0 }
 0x11f   :  { %v147_v22 = vpop.f32.mrf.mxu1 }
 0x120   :  { %v215_v23 = vpop.eup %214 }
 0x121   :  { %156 = vperm.xlu0 %210, %v215_v23  }
 0x193   :  { %v157_v27 = vpop.permute.xlu0 %156 }
 0x194   :  { %v159_v28 = vsel %vm153_vm1, %v157_v27, %v149_v26 }
 0x195   :  { %v160_v29 = vpack.c.bf16 %v159_v28, %v159_v28 }
 0x197   :  { %161 = vst [vmem:[#allocation7] sm:$0x1] %v160_v29 }
 0x198   :  { %172 = dma.vmem_to_hbm [thread:$0]  %s168_s4, 16, %s170_s21, [#allocation4]  }
 0x199   :  { %292 = dma.done.wait [#allocation4], 16  }
 0x19a   :  { %293 = vsyncadd [#allocation4], 4294967280 }
 0x19b   :  { %177 = vsyncpa [#allocation3], 1 }
 0x19c   :  { %178 = vsyncpa [#allocation6], 1 }
 0x19d   :  { %179 = vsyncpa [#allocation4], 1 }

</bundles_post_ra>
